<compile_context>
chip_gen: v6e
topology: v6e:2x2x1
jax: 0.10.0
libtpu: 0.0.40
codegen_flags: <defaults>
</compile_context>

<pallas_src>
import functools

import jax
import jax.numpy as jnp
from jax.experimental import pallas as pl
from jax.experimental.pallas import tpu as pltpu


def _round_up(x, m):
    return ((x + m - 1) // m) * m


_TM_CAP = 1024   # max batch rows per grid step
_TK_CAP = 2048   # max in_features slab per grid step


def _choose_m_tile(m):
    """Batch tile: big enough to amortize per-step pipeline overhead, small
    enough to (a) keep f32 x double-buffers well under the 32 MiB scoped-VMEM
    request and (b) leave >=2 M-steps for v7x's two TensorCores."""
    if m <= 512:
        return m                           # single block ("equal full dim")
    half = (m + 1) // 2
    return min(_TM_CAP, _round_up(half, 128))


def _choose_k_tile(k):
    """Reduction tile over in_features. Must divide K exactly so no grid step
    reads out-of-bounds x columns (those would multiply real weights)."""
    if k <= _TK_CAP:
        return k                           # unblocked K, full dim in one slab
    for tk in (2048, 1024, 512, 256, 128):
        if k % tk == 0:
            return tk
    # TODO(synk): huge in_features with no 128-multiple divisor would need a
    # one-time zero-padded copy of x along K; fall back to unblocked K.
    return k


def linear_kernel(x_ref, wt_ref, b_ref, o_ref):
    """One (tm, tk) x-tile x (tk, n_pad) W^T-slab MXU pass, accumulated into
    the resident f32 output block (initialized with the bias at k == 0)."""
    @pl.when(pl.program_id(1) == 0)
    def _init():
        o_ref[...] = jnp.zeros_like(o_ref) + b_ref[...]   # bias broadcast

    # Cast the f32 activation tile to bf16 on the VPU, f32-accumulate on MXU.
    o_ref[...] += jnp.dot(
        x_ref[...].astype(wt_ref.dtype), wt_ref[...],
        preferred_element_type=jnp.float32)


def prepare_params(weight, bias, compute_dtype=jnp.bfloat16):
    """One-time parameter prep (hoisted out of the forward path).

    weight: (out_features, in_features)  PyTorch nn.Linear layout
    bias:   (out_features,)
    Returns W^T zero-padded to (in_features, N_pad) in compute_dtype and bias
    zero-padded to (1, N_pad) in f32, with N_pad a multiple of 128.
    """
    out_features, in_features = weight.shape
    n_pad = _round_up(out_features, 128)
    wt = jnp.zeros((in_features, n_pad), dtype=compute_dtype)
    wt = wt.at[:, :out_features].set(weight.T.astype(compute_dtype))
    b2d = jnp.zeros((1, n_pad), dtype=jnp.float32)
    b2d = b2d.at[:, :out_features].set(bias.astype(jnp.float32))
    return wt, b2d


@functools.partial(jax.jit, static_argnames=("out_features",))
def softmax_regression_forward(x_nchw, wt_padded, b2d_padded, *, out_features):
    """Equivalent of SoftmaxRegression.forward (returns logits, no softmax).

    x_nchw:     (N, C, H, W) f32
    wt_padded:  (in_features, N_pad)  from prepare_params (bf16)
    b2d_padded: (1, N_pad)            from prepare_params (f32)
    returns:    (N, out_features) f32 logits
    """
    in_features, n_pad = wt_padded.shape

    # X.view(-1, in_features): reshape of contiguous x, no copy; x stays f32
    # in HBM (the bf16 cast happens per-tile inside the kernel).
    x2d = x_nchw.reshape(-1, in_features)
    m = x2d.shape[0]

    tm = _choose_m_tile(m)
    tk = _choose_k_tile(in_features)
    grid = (pl.cdiv(m, tm), pl.cdiv(in_features, tk))

    out = pl.pallas_call(
        linear_kernel,
        out_shape=jax.ShapeDtypeStruct((m, n_pad), jnp.float32),
        grid=grid,
        in_specs=[
            pl.BlockSpec((tm, tk), lambda i, k: (i, k)),      # streamed x tiles
            pl.BlockSpec((tk, n_pad), lambda i, k: (k, 0)),   # W^T slabs
            pl.BlockSpec((1, n_pad), lambda i, k: (0, 0)),    # resident bias
        ],
        out_specs=pl.BlockSpec((tm, n_pad), lambda i, k: (i, 0)),
        compiler_params=pltpu.CompilerParams(
            dimension_semantics=("parallel", "arbitrary"),
            vmem_limit_bytes=32 * 1024 * 1024),
    )(x2d, wt_padded, b2d_padded)

    # Only the zero-padded feature columns are sliced off (no batch padding to
    # remove). A fused softmax / cross-entropy consumer could instead take the
    # padded (m, n_pad) buffer directly and mask columns >= out_features.
    return out[:, :out_features]


if __name__ == "__main__":
    # Small shapes consistent with the module: image-like input flattened.
    batch, c, h, w = 2, 4, 16, 16
    in_features = c * h * w          # 1024
    out_features = 10                # classic softmax-regression head

    key = jax.random.PRNGKey(0)
    kx, kw, kb = jax.random.split(key, 3)

    x = jax.random.normal(kx, (batch, c, h, w), dtype=jnp.float32)
    # Deterministic parameter init (synthetic; mimics nn.Linear uniform range).
    bound = 1.0 / (in_features ** 0.5)
    weight = jax.random.uniform(kw, (out_features, in_features),
                                dtype=jnp.float32, minval=-bound, maxval=bound)
    bias = jax.random.uniform(kb, (out_features,),
                              dtype=jnp.float32, minval=-bound, maxval=bound)

    # One-time param prep (transpose + pad + bf16 cast), then forward.
    wt_p, b_p = prepare_params(weight, bias)
    y = softmax_regression_forward(x, wt_p, b_p, out_features=out_features)
    y = jax.block_until_ready(y)

    # Reference with the same bf16 operand rounding and f32 accumulation.
    x_bf = x.reshape(-1, in_features).astype(jnp.bfloat16).astype(jnp.float32)
    w_bf = weight.astype(jnp.bfloat16).astype(jnp.float32)
    y_ref = x_bf @ w_bf.T + bias

    assert y.shape == (batch, out_features)
    assert jnp.allclose(y, y_ref, atol=1e-3, rtol=1e-3)

    print("KERNEL_OK")
</pallas_src>

<mosaic_0001>
module attributes {stable_mosaic.version = 11 : i64} {
  func.func @linear_kernel(%arg0: i32, %arg1: i32, %arg2: memref<2x1024xf32, #tpu.memory_space<vmem>>, %arg3: memref<1024x128xbf16, #tpu.memory_space<vmem>>, %arg4: memref<1x128xf32, #tpu.memory_space<vmem>>, %arg5: memref<2x128xf32, #tpu.memory_space<vmem>>) attributes {dimension_semantics = [#tpu.dimension_semantics<parallel>, #tpu.dimension_semantics<arbitrary>], iteration_bounds = array<i64: 1, 1>, scalar_prefetch = 0 : i64, scratch_operands = 0 : i64, tpu.core_type = #tpu.core_type<tc>, window_params = [{transform_indices = @transform_0, window_bounds = array<i64: 2, 1024>}, {transform_indices = @transform_1, window_bounds = array<i64: 1024, 128>}, {pipeline_mode = #tpu.pipeline_mode<synchronous>, transform_indices = @transform_2, window_bounds = array<i64: 1, 128>}, {transform_indices = @transform_3, window_bounds = array<i64: 2, 128>}]} {
    %c0_i32 = arith.constant 0 : i32
    %0 = arith.cmpi eq, %arg1, %c0_i32 : i32
    %1 = arith.extui %0 : i1 to i32
    %c0_i32_0 = arith.constant 0 : i32
    %2 = arith.cmpi ne, %1, %c0_i32_0 : i32
    scf.if %2 {
      %cst_8 = arith.constant 0.000000e+00 : f32
      %10 = vector.broadcast %cst_8 : f32 to vector<2x128xf32>
      %c0_9 = arith.constant 0 : index
      %c0_10 = arith.constant 0 : index
      %11 = vector.load %arg4[%c0_9, %c0_10] : memref<1x128xf32, #tpu.memory_space<vmem>>, vector<1x128xf32>
      %12 = vector.broadcast %11 : vector<1x128xf32> to vector<2x128xf32>
      %13 = arith.addf %10, %12 : vector<2x128xf32>
      %c0_11 = arith.constant 0 : index
      %c0_12 = arith.constant 0 : index
      %14 = vector.load %arg5[%c0_11, %c0_12] : memref<2x128xf32, #tpu.memory_space<vmem>>, vector<2x128xf32>
      tpu.vector_store %arg5[%c0_11, %c0_12], %13 {strides = array<i32>} : memref<2x128xf32, #tpu.memory_space<vmem>>, vector<2x128xf32>,
    } else {
    }
    %c0 = arith.constant 0 : index
    %c0_1 = arith.constant 0 : index
    %3 = vector.load %arg5[%c0, %c0_1] : memref<2x128xf32, #tpu.memory_space<vmem>>, vector<2x128xf32>
    %c0_2 = arith.constant 0 : index
    %c0_3 = arith.constant 0 : index
    %4 = vector.load %arg2[%c0_2, %c0_3] : memref<2x1024xf32, #tpu.memory_space<vmem>>, vector<2x1024xf32>
    %5 = arith.truncf %4 : vector<2x1024xf32> to vector<2x1024xbf16>
    %c0_4 = arith.constant 0 : index
    %c0_5 = arith.constant 0 : index
    %6 = vector.load %arg3[%c0_4, %c0_5] : memref<1024x128xbf16, #tpu.memory_space<vmem>>, vector<1024x128xbf16>
    %cst = arith.constant dense<0.000000e+00> : vector<2x128xf32>
    %7 = tpu.matmul %5, %6, %cst {dimension_numbers = #tpu.dot_dimension_numbers<[1], [0], [0], [1], [0, 0, 1, 1], [], []>} : vector<2x1024xbf16>, vector<1024x128xbf16>, vector<2x128xf32> -> vector<2x128xf32>
    %8 = arith.addf %3, %7 : vector<2x128xf32>
    %c0_6 = arith.constant 0 : index
    %c0_7 = arith.constant 0 : index
    %9 = vector.load %arg5[%c0_6, %c0_7] : memref<2x128xf32, #tpu.memory_space<vmem>>, vector<2x128xf32>
    tpu.vector_store %arg5[%c0_6, %c0_7], %8 {strides = array<i32>} : memref<2x128xf32, #tpu.memory_space<vmem>>, vector<2x128xf32>,
    return
  }
  func.func @transform_0(%arg0: i32, %arg1: i32) -> (i32, i32) {
    %c0_i32 = arith.constant 0 : i32
    return %arg0, %arg1 : i32, i32
  }
  func.func @transform_1(%arg0: i32, %arg1: i32) -> (i32, i32) {
    %c0_i32 = arith.constant 0 : i32
    %c0_i32_0 = arith.constant 0 : i32
    return %arg1, %c0_i32 : i32, i32
  }
  func.func @transform_2(%arg0: i32, %arg1: i32) -> (i32, i32) {
    %c0_i32 = arith.constant 0 : i32
    %c0_i32_0 = arith.constant 0 : i32
    %c0_i32_1 = arith.constant 0 : i32
    return %c0_i32, %c0_i32_0 : i32, i32
  }
  func.func @transform_3(%arg0: i32, %arg1: i32) -> (i32, i32) {
    %c0_i32 = arith.constant 0 : i32
    %c0_i32_0 = arith.constant 0 : i32
    return %arg0, %c0_i32 : i32, i32
  }
}

</mosaic_0001>

<bundles_post_ra>
// kernel: softmax_regression_forward.1
= control target key start
LH: loop header
LB: loop body
LE: loop exit
PB: predicated region body
PF: predicated region fallthrough
CT: control target
= control target key end

     0   :  { %8 = vsyncpa [#allocation3], 0  ;;  %s1101_s0 = inlined_call_operand.vmem [shape: f32[2,1024], index: 0, kind: input, shape index: {}]   ;;  %s1102_s1 = inlined_call_operand.hbm [shape: bf16[1024,128], index: 1, kind: input, shape index: {}]   ;;  %s1103_s2 = inlined_call_operand.vmem [shape: f32[1,128], index: 2, kind: input, shape index: {}]   ;;  %s1104_s3 = inlined_call_operand.hbm [shape: f32[2,128], index: 3, kind: output, shape index: {}]  }
   0x1   :  { %9 = vsyncpa [#allocation4], 0  ;;  %s1055_s12 = smov [#allocation2]  }
   0x2   :  { %s17_s13 = sshll.u32 %s1055_s12, 4  ;;  %s18_s13 = int_to_ptr.vmem [resolvable:$true] %s17_s13 }
   0x3   :  { %s1019_s14 = scalar_lea.vmem %s18_s13, 8192  ;;  %p1024_p1 = scmp.lt.s32.totalorder %s18_s13, %s18_s13 }
   0x4   :  { %p1020_p0 = scmp.ne.s32.totalorder %s18_s13, %s1019_s14  ;;  %p1025_p2 = scmp.lt.s32.totalorder %s1019_s14, %s1019_s14 }
   0x6   :  { %p1026_p3 = por %p1025_p2, %p1024_p1 }
   0x8   :  { %p1027_p4 = pnand %p1026_p3, %p1020_p0 }
   0xa   :  { %1030 = shalt.err (!%p1027_p4)
}
   0xb   :  { %s1056_s15 = smov 64   ;;  %s1057_s16 = smov 4  }
   0xc   :  { %23 = dma.hbm_to_vmem [thread:$0]  %s1102_s1, 8192, %s18_s13, [#allocation3], %s1056_s15, %s1056_s15, %s1057_s16  }
   0xd   :  { %1051 = dma.done.wait [#allocation3], 8192  }
   0xe   :  { %1052 = vsyncadd [#allocation3], 4294959104  ;;  %v945_v0 = vld [vmem:[#allocation2 + $0x78] sm:$0xff]   ;;  %v949_v4 = vld [vmem:[#allocation2 + $0x70] sm:$0xff]   ;;  %v1058_v22 = vmov 1983009808   ;;  %v52_v24 = vlaneseq }
   0xf   :  { %v946_v1 = vld [vmem:[#allocation2 + $0xf8] sm:$0xff]   ;;  %852 = vmatprep.subr.bf16.mxu0 %v945_v0  ;;  %v950_v5 = vld [vmem:[#allocation2 + $0xf0] sm:$0xff]   ;;  %v953_v8 = vld [vmem:[#allocation2 + $0x68] sm:$0xff]   ;;  %v50_v23 = vunpack.c.l.s4 %v1058_v22 }
  0x10   :  { %v947_v2 = vld [vmem:[#allocation2 + $0x38] sm:$0xff]   ;;  %874 = vmatprep.subr.bf16.mxu1 %v946_v1  ;;  %v951_v6 = vld [vmem:[#allocation2 + $0x30] sm:$0xff]   ;;  %v954_v9 = vld [vmem:[#allocation2 + $0xe8] sm:$0xff]   ;;  %v53_v30 = vshrl.u32 %v52_v24, 7 }
  0x11   :  { %v948_v3 = vld [vmem:[#allocation2 + $0xb8] sm:$0xff]   ;;  %853 = vmatpush3.bf16.msra.mxu0 %v947_v2  ;;  %v952_v7 = vld [vmem:[#allocation2 + $0xb0] sm:$0xff]   ;;  %v955_v10 = vld [vmem:[#allocation2 + $0x28] sm:$0xff]   ;;  %v51_v29 = vunpack.c.0.s8 %v50_v23 }
  0x12   :  { %875 = vmatpush3.bf16.msra.mxu1 %v948_v3  ;;  %854 = vmatprep.subr.bf16.mxu0 %v949_v4  ;;  %v956_v11 = vld [vmem:[#allocation2 + $0xa8] sm:$0xff]   ;;  %v957_v12 = vld [vmem:[#allocation2 + $0x60] sm:$0xff]   ;;  %v961_v16 = vld [vmem:[#allocation2 + $0x58] sm:$0xff]  }
  0x13   :  { %876 = vmatprep.subr.bf16.mxu1 %v950_v5  ;;  %v958_v13 = vld [vmem:[#allocation2 + $0xe0] sm:$0xff]   ;;  %v962_v17 = vld [vmem:[#allocation2 + $0xd8] sm:$0xff]   ;;  %v965_v20 = vld [vmem:[#allocation2 + $0x50] sm:$0xff]   ;;  %v1083_v35 = vsub.s32 %v51_v29, %v53_v30 }
  0x14   :  { %v959_v14 = vld [vmem:[#allocation2 + $0x20] sm:$0xff]   ;;  %v963_v18 = vld [vmem:[#allocation2 + $0x18] sm:$0xff]   ;;  %v966_v21 = vld [vmem:[#allocation2 + $0xd0] sm:$0xff]  }
  0x15   :  { %855 = vmatpush3.bf16.msra.mxu0 %v951_v6  ;;  %v960_v15 = vld [vmem:[#allocation2 + $0xa0] sm:$0xff]   ;;  %v964_v19 = vld [vmem:[#allocation2 + $0x98] sm:$0xff]   ;;  %v967_v25 = vld [vmem:[#allocation2 + $0x10] sm:$0xff]  }
  0x16   :  { %877 = vmatpush3.bf16.msra.mxu1 %v952_v7  ;;  %856 = vmatprep.subr.bf16.mxu0 %v953_v8  ;;  %v968_v26 = vld [vmem:[#allocation2 + $0x90] sm:$0xff]   ;;  %v969_v27 = vld [vmem:[#allocation2 + $0x48] sm:$0xff]   ;;  %v973_v33 = vld [vmem:[#allocation2 + $0x40] sm:$0xff]  }
  0x17   :  { %878 = vmatprep.subr.bf16.mxu1 %v954_v9  ;;  %v970_v28 = vld [vmem:[#allocation2 + $0xc8] sm:$0xff]   ;;  %v974_v34 = vld [vmem:[#allocation2 + $0xc0] sm:$0xff]   ;;  %v978_v41 = vld [vmem:[#allocation2 + $0x178] sm:$0xff]  }
  0x18   :  { %v971_v31 = vld [vmem:[#allocation2 + $0x8] sm:$0xff]   ;;  %v975_v36 = vld [vmem:[#allocation2] sm:$0xff]   ;;  %v979_v42 = vld [vmem:[#allocation2 + $0x1f8] sm:$0xff]  }
  0x19   :  { %857 = vmatpush3.bf16.msra.mxu0 %v955_v10  ;;  %v972_v32 = vld [vmem:[#allocation2 + $0x88] sm:$0xff]   ;;  %v976_v37 = vld [vmem:[#allocation2 + $0x80] sm:$0xff]   ;;  %v980_v48 = vld [vmem:[#allocation2 + $0x138] sm:$0xff]  }
  0x1a   :  { %879 = vmatpush3.bf16.msra.mxu1 %v956_v11  ;;  %858 = vmatprep.subr.bf16.mxu0 %v957_v12  ;;  %v44_v38 = vld [vmem:[%s1101_s0] sm:$0xff]  ;;  %v982_v50 = vld [vmem:[#allocation2 + $0x170] sm:$0xff]   ;;  %v981_v52 = vld [vmem:[#allocation2 + $0x1b8] sm:$0xff]  }
  0x1b   :  { %880 = vmatprep.subr.bf16.mxu1 %v958_v13  ;;  %v55_v39 = vrot.slane %v44_v38, %v1083_v35  ;;  %v48_v40 = vcombine.high %v44_v38, %v44_v38  ;;  %v983_v53 = vld [vmem:[#allocation2 + $0x1f0] sm:$0xff]   ;;  %v986_v55 = vld [vmem:[#allocation2 + $0x168] sm:$0xff]   ;;  %v990_v59 = vld [vmem:[#allocation2 + $0x160] sm:$0xff]  }
  0x1c   :  { %v984_v54 = vld [vmem:[#allocation2 + $0x130] sm:$0xff]   ;;  %v987_v57 = vld [vmem:[#allocation2 + $0x1e8] sm:$0xff]   ;;  %v991_v61 = vld [vmem:[#allocation2 + $0x1e0] sm:$0xff]  }
  0x1d   :  { %859 = vmatpush3.bf16.msra.mxu0 %v959_v14  ;;  %v63_v43 = vcombine.high %v55_v39, %v55_v39  ;;  %v62_v44 = vrot.slane %v48_v40, %v1083_v35  ;;  %v90_v45 = vpack.c.bf16 %v55_v39, %v55_v39  ;;  %v985_v56 = vld [vmem:[#allocation2 + $0x1b0] sm:$0xff]   ;;  %v988_v58 = vld [vmem:[#allocation2 + $0x128] sm:$0xff]   ;;  %v992_v62 = vld [vmem:[#allocation2 + $0x120] sm:$0xff]  }
  0x1e   :  { %881 = vmatpush3.bf16.msra.mxu1 %v960_v15  ;;  %860 = vmatprep.subr.bf16.mxu0 %v961_v16  ;;  %v989_v60 = vld [vmem:[#allocation2 + $0x1a8] sm:$0xff]   ;;  %v994_v63 = vld [vmem:[#allocation2 + $0x158] sm:$0xff]   ;;  %v993_v0 = vld [vmem:[#allocation2 + $0x1a0] sm:$0xff]  }
  0x1f   :  { %882 = vmatprep.subr.bf16.mxu1 %v962_v17  ;;  %v91_v46 = vpack.c.bf16 %v63_v43, %v63_v43  ;;  %v64_v47 = vcombine.high %v62_v44, %v62_v44  ;;  %v92_v49 = vpack.c.bf16 %v62_v44, %v62_v44  ;;  %v995_v1 = vld [vmem:[#allocation2 + $0x1d8] sm:$0xff]   ;;  %v998_v3 = vld [vmem:[#allocation2 + $0x150] sm:$0xff]   ;;  %v1002_v7 = vld [vmem:[#allocation2 + $0x148] sm:$0xff]  }
  0x20   :  { %v996_v2 = vld [vmem:[#allocation2 + $0x118] sm:$0xff]   ;;  %v999_v5 = vld [vmem:[#allocation2 + $0x1d0] sm:$0xff]   ;;  %v1003_v9 = vld [vmem:[#allocation2 + $0x1c8] sm:$0xff]  }
  0x21   :  { %861 = vmatpush3.bf16.msra.mxu0 %v963_v18  ;;  %642 = vmatprep.mubr.bf16.mxu0 %v91_v46  ;;  %v93_v51 = vpack.c.bf16 %v64_v47, %v64_v47  ;;  %v997_v4 = vld [vmem:[#allocation2 + $0x198] sm:$0xff]   ;;  %v1000_v6 = vld [vmem:[#allocation2 + $0x110] sm:$0xff]   ;;  %v1004_v10 = vld [vmem:[#allocation2 + $0x108] sm:$0xff]  }
  0x22   :  { %883 = vmatpush3.bf16.msra.mxu1 %v964_v19  ;;  %862 = vmatprep.subr.bf16.mxu0 %v965_v20  ;;  %v1001_v8 = vld [vmem:[#allocation2 + $0x190] sm:$0xff]   ;;  %v1006_v11 = vld [vmem:[#allocation2 + $0x140] sm:$0xff]   ;;  %v1005_v12 = vld [vmem:[#allocation2 + $0x188] sm:$0xff]  }
  0x23   :  { %884 = vmatprep.subr.bf16.mxu1 %v966_v21  ;;  %682 = vmatprep.mubr.bf16.mxu1 %v93_v51  ;;  %v1007_v13 = vld [vmem:[#allocation2 + $0x1c0] sm:$0xff]   ;;  %v45_v14 = vld [vmem:[%s1101_s0 + $0x8] sm:$0xff] }
  0x24   :  { %v1008_v15 = vld [vmem:[#allocation2 + $0x100] sm:$0xff]   ;;  %v72_v16 = vrot.slane %v45_v14, %v1083_v35  ;;  %v65_v17 = vcombine.high %v45_v14, %v45_v14 }
  0x25   :  { %863 = vmatpush3.bf16.msra.mxu0 %v967_v25  ;;  %v1009_v18 = vld [vmem:[#allocation2 + $0x180] sm:$0xff]  }
  0x26   :  { %885 = vmatpush3.bf16.msra.mxu1 %v968_v26  ;;  %864 = vmatprep.subr.bf16.mxu0 %v969_v27  ;;  %v80_v19 = vcombine.high %v72_v16, %v72_v16  ;;  %v79_v20 = vrot.slane %v65_v17, %v1083_v35  ;;  %v94_v21 = vpack.c.bf16 %v72_v16, %v72_v16  ;;  %v787_v26 = vld [vmem:[%s1103_s2] ss:$0 sm:$0xff]  ;;  %s1059_s2 = smov [#allocation5]  }
  0x27   :  { %886 = vmatprep.subr.bf16.mxu1 %v970_v28  ;;  %42 = vst [vmem:[#allocation5] sm:$0x3] %v787_v26  ;;  %s778_s23 = sshll.u32 %s1059_s2, 4  ;;  %s779_s23 = int_to_ptr.vmem [resolvable:$true] %s778_s23 }
  0x28   :  { %v95_v22 = vpack.c.bf16 %v80_v19, %v80_v19  ;;  %v81_v23 = vcombine.high %v79_v20, %v79_v20  ;;  %v96_v24 = vpack.c.bf16 %v79_v20, %v79_v20  ;;  %s1031_s24 = scalar_lea.vmem %s779_s23, 32  ;;  %p1036_p6 = scmp.lt.s32.totalorder %s779_s23, %s779_s23 }
  0x29   :  { %865 = vmatpush3.bf16.msra.mxu0 %v971_v31  ;;  %p1032_p5 = scmp.ne.s32.totalorder %s779_s23, %s1031_s24  ;;  %p1037_p7 = scmp.lt.s32.totalorder %s1031_s24, %s1031_s24 }
  0x2a   :  { %887 = vmatpush3.bf16.msra.mxu1 %v972_v32  ;;  %866 = vmatprep.subr.bf16.mxu0 %v973_v33  ;;  %v97_v25 = vpack.c.bf16 %v81_v23, %v81_v23 }
  0x2b   :  { %888 = vmatprep.subr.bf16.mxu1 %v974_v34  ;;  %p1038_p8 = por %p1037_p7, %p1036_p6 }
  0x2d   :  { %867 = vmatpush3.bf16.msra.mxu0 %v975_v36  ;;  %p1039_p9 = pnand %p1038_p8, %p1032_p5 }
  0x2e   :  { %889 = vmatpush3.bf16.msra.mxu1 %v976_v37  ;;  %896 = vmatprep.subr.bf16.mxu0 %v978_v41  ;;  %v43_v46 = vld [vmem:[#allocation5] sm:$0x3] }
  0x2f   :  { %918 = vmatprep.subr.bf16.mxu1 %v979_v42 }
  0x30   :  { %643 = vmatmul.mubr.bf16.vlgmr.msra.gmra.mxu0 %v90_v45 }
  0x31   :  { %897 = vmatpush3.bf16.msra.mxu0 %v980_v48  ;;  %683 = vmatmul.mubr.bf16.vlgmr.msra.gmra.mxu1 %v92_v49 }
  0x32   :  { %898 = vmatprep.subr.bf16.mxu0 %v982_v50  ;;  %919 = vmatpush3.bf16.msra.mxu1 %v981_v52 }
  0x33   :  { %920 = vmatprep.subr.bf16.mxu1 %v983_v53  ;;  %722 = vmatprep.mubr.bf16.mxu0 %v95_v22 }
  0x34   :  { %762 = vmatprep.mubr.bf16.mxu1 %v97_v25 }
  0x35   :  { %899 = vmatpush3.bf16.msra.mxu0 %v984_v54 }
  0x36   :  { %900 = vmatprep.subr.bf16.mxu0 %v986_v55  ;;  %921 = vmatpush3.bf16.msra.mxu1 %v985_v56 }
  0x37   :  { %922 = vmatprep.subr.bf16.mxu1 %v987_v57 }
  0x39   :  { %901 = vmatpush3.bf16.msra.mxu0 %v988_v58 }
  0x3a   :  { %902 = vmatprep.subr.bf16.mxu0 %v990_v59  ;;  %923 = vmatpush3.bf16.msra.mxu1 %v989_v60 }
  0x3b   :  { %924 = vmatprep.subr.bf16.mxu1 %v991_v61 }
  0x3d   :  { %903 = vmatpush3.bf16.msra.mxu0 %v992_v62 }
  0x3e   :  { %904 = vmatprep.subr.bf16.mxu0 %v994_v63  ;;  %925 = vmatpush3.bf16.msra.mxu1 %v993_v0 }
  0x3f   :  { %926 = vmatprep.subr.bf16.mxu1 %v995_v1 }
  0x41   :  { %905 = vmatpush3.bf16.msra.mxu0 %v996_v2 }
  0x42   :  { %906 = vmatprep.subr.bf16.mxu0 %v998_v3  ;;  %927 = vmatpush3.bf16.msra.mxu1 %v997_v4 }
  0x43   :  { %928 = vmatprep.subr.bf16.mxu1 %v999_v5 }
  0x45   :  { %907 = vmatpush3.bf16.msra.mxu0 %v1000_v6 }
  0x46   :  { %908 = vmatprep.subr.bf16.mxu0 %v1002_v7  ;;  %929 = vmatpush3.bf16.msra.mxu1 %v1001_v8 }
  0x47   :  { %930 = vmatprep.subr.bf16.mxu1 %v1003_v9 }
  0x49   :  { %909 = vmatpush3.bf16.msra.mxu0 %v1004_v10 }
  0x4a   :  { %910 = vmatprep.subr.bf16.mxu0 %v1006_v11  ;;  %931 = vmatpush3.bf16.msra.mxu1 %v1005_v12 }
  0x4b   :  { %932 = vmatprep.subr.bf16.mxu1 %v1007_v13 }
  0x4d   :  { %911 = vmatpush3.bf16.msra.mxu0 %v1008_v15 }
  0x4e   :  { %933 = vmatpush3.bf16.msra.mxu1 %v1009_v18 }
  0x50   :  { %723 = vmatmul.mubr.bf16.vlgmr.msra.gmra.mxu0 %v94_v21 }
  0x51   :  { %763 = vmatmul.mubr.bf16.vlgmr.msra.gmra.mxu1 %v96_v24 }
  0xf0   :  { %v868_v27 = vpop.f32.mrf.mxu0 }
  0xf1   :  { %v890_v28 = vpop.f32.mrf.mxu1 }
  0xf2   :  { %v869_v29 = vpop.f32.mrf.mxu0 }
  0xf3   :  { %v891_v30 = vpop.f32.mrf.mxu1  ;;  %v870_v35 = vadd.f32 %v869_v29, %v868_v27 }
  0xf4   :  { %v871_v31 = vpop.f32.mrf.mxu0  ;;  %v892_v36 = vadd.f32 %v891_v30, %v890_v28 }
  0xf5   :  { %v893_v32 = vpop.f32.mrf.mxu1 }
  0xf6   :  { %v872_v33 = vpop.f32.mrf.mxu0  ;;  %v685_v40 = vadd.f32 %v892_v36, %v870_v35 }
  0xf7   :  { %v894_v34 = vpop.f32.mrf.mxu1 }
 0x110   :  { %v912_v37 = vpop.f32.mrf.mxu0 }
 0x111   :  { %v934_v38 = vpop.f32.mrf.mxu1 }
 0x112   :  { %v913_v39 = vpop.f32.mrf.mxu0 }
 0x113   :  { %v914_v41 = vadd.f32 %v913_v39, %v912_v37  ;;  %v935_v42 = vpop.f32.mrf.mxu1 }
 0x114   :  { %v915_v43 = vpop.f32.mrf.mxu0  ;;  %v936_v45 = vadd.f32 %v935_v42, %v934_v38 }
 0x115   :  { %v725_v44 = vadd.f32 %v914_v41, %v685_v40  ;;  %v937_v47 = vpop.f32.mrf.mxu1 }
 0x116   :  { %v916_v48 = vpop.f32.mrf.mxu0 }
 0x117   :  { %v765_v49 = vadd.f32 %v936_v45, %v725_v44  ;;  %v938_v50 = vpop.f32.mrf.mxu1 }
 0x119   :  { %v770_v51 = vadd.f32 %v765_v49, %v43_v46 }
 0x11b   :  { %771 = vst [vmem:[#allocation5] sm:$0x3] %v770_v51 }
 0x11c   :  { %1042 = shalt.err (!%p1039_p9)
}
 0x11d   :  { %781 = dma.vmem_to_hbm [thread:$0]  %s779_s23, 32, %s1104_s3, [#allocation4]  }
 0x11e   :  { %1053 = dma.done.wait [#allocation4], 32  }
 0x11f   :  { %1054 = vsyncadd [#allocation4], 4294967264 }
 0x120   :  { %785 = vsyncpa [#allocation3], 1 }
 0x121   :  { %786 = vsyncpa [#allocation4], 1 }

</bundles_post_ra>
